<compile_context>
chip_gen: v6e
topology: v6e:2x2x1
jax: 0.10.0
libtpu: 0.0.40
codegen_flags: <defaults>
</compile_context>

<pallas_src>
import jax
import jax.numpy as jnp
from jax.experimental import pallas as pl
from jax.experimental.pallas import tpu as pltpu


def _pool_proj_kernel(hidden_ref, mask_ref, w_ref, b_ref, emb_ref, acc_ref, len_ref):
    """One (batch-tile, seq-tile) grid step.

    hidden_ref: [TB, TS, H]  bf16  backbone last_hidden_state tile (streamed)
    mask_ref:   [TB, 1, TS]  bf16  0/1 attention mask tile (lane-dense, streamed)
    w_ref:      [H, H]       f32   projection weight, pre-transposed (in x out), resident
    b_ref:      [1, H]       f32   projection bias, resident
    emb_ref:    [TB, H]      f32   output embedding tile (written on last seq step)
    acc_ref:    [TB, H]      f32   VMEM scratch: masked-sum accumulator
    len_ref:    [TB, 1]      f32   VMEM scratch: token-count accumulator
    """
    s = pl.program_id(1)

    @pl.when(s == 0)
    def _init():
        acc_ref[...] = jnp.zeros_like(acc_ref)
        len_ref[...] = jnp.zeros_like(len_ref)

    hidden = hidden_ref[...]            # [TB, TS, H]
    mask = mask_ref[...]                # [TB, 1, TS]

    # Masked sum over this seq tile as a batched MXU contraction:
    #   acc[b, h] += sum_s mask[b, s] * hidden[b, s, h]
    msum = jnp.einsum("bqs,bsh->bqh", mask, hidden,
                      preferred_element_type=jnp.float32)        # [TB, 1, H] f32
    acc_ref[...] += msum[:, 0, :]

    # Token count per row (accumulate in f32: TS may exceed bf16 integer range).
    len_ref[...] += jnp.sum(mask.astype(jnp.float32), axis=2)    # [TB, 1]

    @pl.when(s == pl.num_programs(1) - 1)
    def _finalize():
        # clamp(min=1e-9) then reciprocal on the EUP slot; the per-row scale
        # commutes with the row-wise projection, so apply it once post-matmul.
        inv_len = pl.reciprocal(jnp.maximum(len_ref[...], 1e-9), approx=True)  # [TB, 1]
        proj = jnp.dot(acc_ref[...], w_ref[...],
                       preferred_element_type=jnp.float32)       # [TB, H]
        emb_ref[...] = proj * inv_len + b_ref[...]


def _pick_seq_tile(S):
    # Mask tile is lane-dense: TS must be a multiple of 128 or equal to S.
    for ts in (512, 256, 128):
        if S % ts == 0:
            return ts
    return S


def _pick_batch_tile(B):
    # Output tile is (TB, H): TB must be a multiple of 8 or equal to B.
    # TB = 8 keeps the double-buffered bf16 hidden tile (2*8*512*H*2B) plus the
    # resident f32 weight (H*H*4B) comfortably under the default scoped VMEM on
    # v5e/v6e and the 64 MiB physical VMEM on v7x for H up to ~1024.
    if B % 8 == 0:
        return 8
    return B


def encode(hidden, attention_mask, proj_w_t, proj_b):
    """Pallas-backed ContrastiveModel.encode (post-backbone): masked-mean pool + proj."""
    B, S, H = hidden.shape
    dt = hidden.dtype
    mask = attention_mask.astype(dt).reshape(B, 1, S)     # lane-dense mask layout
    w = proj_w_t.astype(jnp.float32)
    b2 = proj_b.astype(jnp.float32).reshape(1, H)

    TB = _pick_batch_tile(B)
    TS = _pick_seq_tile(S)

    cost = pl.CostEstimate(
        flops=2 * B * S * H + 2 * B * H * H,
        transcendentals=B,
        bytes_accessed=(B * S * H * dt.itemsize + B * S * dt.itemsize
                        + H * H * 4 + H * 4 + B * H * 4),
    )

    return pl.pallas_call(
        _pool_proj_kernel,
        out_shape=jax.ShapeDtypeStruct((B, H), jnp.float32),
        grid=(B // TB, S // TS),
        in_specs=[
            pl.BlockSpec((TB, TS, H), lambda i, s: (i, s, 0)),   # streamed hidden
            pl.BlockSpec((TB, 1, TS), lambda i, s: (i, 0, s)),   # streamed mask
            pl.BlockSpec((H, H), lambda i, s: (0, 0)),           # resident weight
            pl.BlockSpec((1, H), lambda i, s: (0, 0)),           # resident bias
        ],
        out_specs=pl.BlockSpec((TB, H), lambda i, s: (i, 0)),
        scratch_shapes=[
            pltpu.VMEM((TB, H), jnp.float32),   # masked-sum accumulator
            pltpu.VMEM((TB, 1), jnp.float32),   # token-count accumulator
        ],
        compiler_params=pltpu.CompilerParams(
            dimension_semantics=("parallel", "arbitrary"),
            vmem_limit_bytes=48 * 1024 * 1024,
        ),
        cost_estimate=cost,
    )(hidden, mask, w, b2)


def contrastive_forward(batch, params):
    """ContrastiveModel.forward: returns (emb1, emb2). Both sides share one kernel call."""
    embed_table = params["embed_table"]
    # TODO(synk): the DebertaV2 disentangled-attention backbone has no clean
    # single-kernel Pallas equivalent; its last_hidden_state is stood in by a
    # deterministic bf16 token-embedding lookup (bf16 = real backbone output dtype).
    ids = jnp.concatenate([batch["input_ids1"], batch["input_ids2"]], axis=0)
    masks = jnp.concatenate([batch["attention_mask1"], batch["attention_mask2"]], axis=0)
    hidden = jnp.take(embed_table, ids, axis=0)                        # [2B, S, H] bf16
    emb = encode(hidden, masks, params["proj_w_t"], params["proj_b"])  # [2B, H]  f32
    n = batch["input_ids1"].shape[0]
    return emb[:n], emb[n:]


def _reference_encode(hidden, attention_mask, proj_w_t, proj_b):
    """Pure-JAX reference matching the PyTorch semantics (for verification)."""
    h = hidden.astype(jnp.float32)
    m = attention_mask.astype(jnp.float32)[:, :, None]
    sum_hidden = jnp.sum(h * m, axis=1)
    lengths = jnp.maximum(
        jnp.sum(attention_mask.astype(jnp.float32), axis=1, keepdims=True), 1e-9)
    mean_hidden = sum_hidden / lengths
    return mean_hidden @ proj_w_t.astype(jnp.float32) + proj_b.astype(jnp.float32)[None, :]


if __name__ == "__main__":
    # Small shapes consistent with the module's forward:
    B, S, H, V = 2, 8, 128, 64   # batch, seq, hidden_size, (toy) vocab

    key = jax.random.PRNGKey(0)
    k_ids1, k_ids2, k_emb, k_w, k_b = jax.random.split(key, 5)

    input_ids1 = jax.random.randint(k_ids1, (B, S), 0, V, dtype=jnp.int32)
    input_ids2 = jax.random.randint(k_ids2, (B, S), 0, V, dtype=jnp.int32)
    # Ragged-ish attention masks (1 = real token, 0 = pad).
    attention_mask1 = (jnp.arange(S)[None, :] < jnp.array([S, S - 3])[:, None]).astype(jnp.int32)
    attention_mask2 = (jnp.arange(S)[None, :] < jnp.array([S - 2, S])[:, None]).astype(jnp.int32)

    # Deterministic parameter init (synthetic; shapes follow the module __init__).
    embed_table = (jax.random.normal(k_emb, (V, H), jnp.float32) * 0.02).astype(jnp.bfloat16)
    proj_w = jax.random.normal(k_w, (H, H), jnp.float32) * 0.02    # torch Linear: [out, in]
    proj_b = jax.random.normal(k_b, (H,), jnp.float32) * 0.02
    params = {"embed_table": embed_table, "proj_w_t": proj_w.T, "proj_b": proj_b}

    batch = {
        "input_ids1": input_ids1, "attention_mask1": attention_mask1,
        "input_ids2": input_ids2, "attention_mask2": attention_mask2,
    }

    emb1, emb2 = contrastive_forward(batch, params)
    emb1 = jax.block_until_ready(emb1)
    emb2 = jax.block_until_ready(emb2)

    # Verify against a pure-JAX reference of the same semantics (same bf16 hidden).
    h1 = jnp.take(embed_table, input_ids1, axis=0)
    h2 = jnp.take(embed_table, input_ids2, axis=0)
    ref1 = _reference_encode(h1, attention_mask1, params["proj_w_t"], proj_b)
    ref2 = _reference_encode(h2, attention_mask2, params["proj_w_t"], proj_b)

    assert emb1.shape == (B, H) and emb2.shape == (B, H)
    assert jnp.allclose(emb1, ref1, atol=2e-3, rtol=2e-3)
    assert jnp.allclose(emb2, ref2, atol=2e-3, rtol=2e-3)

    print("KERNEL_OK")
</pallas_src>

<mosaic_0001>
module attributes {stable_mosaic.version = 11 : i64} {
  func.func @_pool_proj_kernel(%arg0: i32, %arg1: i32, %arg2: memref<4x8x128xbf16, #tpu.memory_space<vmem>>, %arg3: memref<4x1x8xbf16, #tpu.memory_space<vmem>>, %arg4: memref<128x128xf32, #tpu.memory_space<vmem>>, %arg5: memref<1x128xf32, #tpu.memory_space<vmem>>, %arg6: memref<4x128xf32, #tpu.memory_space<vmem>>, %arg7: memref<4x128xf32, #tpu.memory_space<vmem>>, %arg8: memref<4x1xf32, #tpu.memory_space<vmem>>) attributes {dimension_semantics = [#tpu.dimension_semantics<parallel>, #tpu.dimension_semantics<arbitrary>], iteration_bounds = array<i64: 1, 1>, scalar_prefetch = 0 : i64, scratch_operands = 2 : i64, tpu.core_type = #tpu.core_type<tc>, window_params = [{transform_indices = @transform_0, window_bounds = array<i64: 4, 8, 128>}, {transform_indices = @transform_1, window_bounds = array<i64: 4, 1, 8>}, {pipeline_mode = #tpu.pipeline_mode<synchronous>, transform_indices = @transform_2, window_bounds = array<i64: 128, 128>}, {pipeline_mode = #tpu.pipeline_mode<synchronous>, transform_indices = @transform_3, window_bounds = array<i64: 1, 128>}, {transform_indices = @transform_4, window_bounds = array<i64: 4, 128>}]} {
    %c0_i32 = arith.constant 0 : i32
    %0 = arith.cmpi eq, %arg1, %c0_i32 : i32
    %1 = arith.extui %0 : i1 to i32
    %c0_i32_0 = arith.constant 0 : i32
    %2 = arith.cmpi ne, %1, %c0_i32_0 : i32
    scf.if %2 {
      %cst_17 = arith.constant 0.000000e+00 : f32
      %18 = vector.broadcast %cst_17 : f32 to vector<4x128xf32>
      %c0_18 = arith.constant 0 : index
      %c0_19 = arith.constant 0 : index
      %19 = vector.load %arg7[%c0_18, %c0_19] : memref<4x128xf32, #tpu.memory_space<vmem>>, vector<4x128xf32>
      tpu.vector_store %arg7[%c0_18, %c0_19], %18 {strides = array<i32>} : memref<4x128xf32, #tpu.memory_space<vmem>>, vector<4x128xf32>,
      %cst_20 = arith.constant 0.000000e+00 : f32
      %20 = vector.broadcast %cst_20 : f32 to vector<4x1xf32>
      %c0_21 = arith.constant 0 : index
      %c0_22 = arith.constant 0 : index
      %21 = vector.load %arg8[%c0_21, %c0_22] : memref<4x1xf32, #tpu.memory_space<vmem>>, vector<4x1xf32>
      tpu.vector_store %arg8[%c0_21, %c0_22], %20 {strides = array<i32>} : memref<4x1xf32, #tpu.memory_space<vmem>>, vector<4x1xf32>,
    } else {
    }
    %c0 = arith.constant 0 : index
    %c0_1 = arith.constant 0 : index
    %c0_2 = arith.constant 0 : index
    %3 = vector.load %arg2[%c0, %c0_1, %c0_2] : memref<4x8x128xbf16, #tpu.memory_space<vmem>>, vector<4x8x128xbf16>
    %c0_3 = arith.constant 0 : index
    %c0_4 = arith.constant 0 : index
    %c0_5 = arith.constant 0 : index
    %4 = vector.load %arg3[%c0_3, %c0_4, %c0_5] : memref<4x1x8xbf16, #tpu.memory_space<vmem>>, vector<4x1x8xbf16>
    "tpu.trace_start"() <{level = 10 : i32, message = "bqs,bsh->bqh"}> : () -> ()
    %cst = arith.constant dense<0.000000e+00> : vector<4x1x128xf32>
    %5 = tpu.matmul %4, %3, %cst {dimension_numbers = #tpu.dot_dimension_numbers<[2], [1], [1], [2], [0, 0, 0, 1, 1, 2], [0], [0]>} : vector<4x1x8xbf16>, vector<4x8x128xbf16>, vector<4x1x128xf32> -> vector<4x1x128xf32>
    "tpu.trace_stop"() : () -> ()
    %c0_6 = arith.constant 0 : index
    %c0_7 = arith.constant 0 : index
    %6 = vector.load %arg7[%c0_6, %c0_7] : memref<4x128xf32, #tpu.memory_space<vmem>>, vector<4x128xf32>
    %7 = vector.shape_cast %5 : vector<4x1x128xf32> to vector<4x128xf32>
    %8 = arith.addf %6, %7 : vector<4x128xf32>
    %c0_8 = arith.constant 0 : index
    %c0_9 = arith.constant 0 : index
    %9 = vector.load %arg7[%c0_8, %c0_9] : memref<4x128xf32, #tpu.memory_space<vmem>>, vector<4x128xf32>
    tpu.vector_store %arg7[%c0_8, %c0_9], %8 {strides = array<i32>} : memref<4x128xf32, #tpu.memory_space<vmem>>, vector<4x128xf32>,
    %c0_10 = arith.constant 0 : index
    %c0_11 = arith.constant 0 : index
    %10 = vector.load %arg8[%c0_10, %c0_11] : memref<4x1xf32, #tpu.memory_space<vmem>>, vector<4x1xf32>
    %11 = arith.extf %4 : vector<4x1x8xbf16> to vector<4x1x8xf32>
    %cst_12 = arith.constant dense<0.000000e+00> : vector<4x1xf32>
    %12 = vector.multi_reduction <add>, %11, %cst_12 [2] : vector<4x1x8xf32> to vector<4x1xf32>
    %13 = arith.addf %10, %12 : vector<4x1xf32>
    %c0_13 = arith.constant 0 : index
    %c0_14 = arith.constant 0 : index
    %14 = vector.load %arg8[%c0_13, %c0_14] : memref<4x1xf32, #tpu.memory_space<vmem>>, vector<4x1xf32>
    tpu.vector_store %arg8[%c0_13, %c0_14], %13 {strides = array<i32>} : memref<4x1xf32, #tpu.memory_space<vmem>>, vector<4x1xf32>,
    %c0_i32_15 = arith.constant 0 : i32
    %15 = arith.cmpi eq, %arg1, %c0_i32_15 : i32
    %16 = arith.extui %15 : i1 to i32
    %c0_i32_16 = arith.constant 0 : i32
    %17 = arith.cmpi ne, %16, %c0_i32_16 : i32
    scf.if %17 {
      %c0_17 = arith.constant 0 : index
      %c0_18 = arith.constant 0 : index
      %18 = vector.load %arg8[%c0_17, %c0_18] : memref<4x1xf32, #tpu.memory_space<vmem>>, vector<4x1xf32>
      %cst_19 = arith.constant 9.99999971E-10 : f32
      %19 = vector.broadcast %cst_19 : f32 to vector<4x1xf32>
      %20 = arith.maximumf %18, %19 : vector<4x1xf32>
      %21 = tpu.reciprocal %20 {approx = true} : vector<4x1xf32> -> vector<4x1xf32>
      %c0_20 = arith.constant 0 : index
      %c0_21 = arith.constant 0 : index
      %22 = vector.load %arg7[%c0_20, %c0_21] : memref<4x128xf32, #tpu.memory_space<vmem>>, vector<4x128xf32>
      %c0_22 = arith.constant 0 : index
      %c0_23 = arith.constant 0 : index
      %23 = vector.load %arg4[%c0_22, %c0_23] : memref<128x128xf32, #tpu.memory_space<vmem>>, vector<128x128xf32>
      %cst_24 = arith.constant dense<0.000000e+00> : vector<4x128xf32>
      %24 = tpu.matmul %22, %23, %cst_24 {dimension_numbers = #tpu.dot_dimension_numbers<[1], [0], [0], [1], [0, 0, 1, 1], [], []>} : vector<4x128xf32>, vector<128x128xf32>, vector<4x128xf32> -> vector<4x128xf32>
      %25 = vector.broadcast %21 : vector<4x1xf32> to vector<4x128xf32>
      %26 = arith.mulf %24, %25 : vector<4x128xf32>
      %c0_25 = arith.constant 0 : index
      %c0_26 = arith.constant 0 : index
      %27 = vector.load %arg5[%c0_25, %c0_26] : memref<1x128xf32, #tpu.memory_space<vmem>>, vector<1x128xf32>
      %28 = vector.broadcast %27 : vector<1x128xf32> to vector<4x128xf32>
      %29 = arith.addf %26, %28 : vector<4x128xf32>
      %c0_27 = arith.constant 0 : index
      %c0_28 = arith.constant 0 : index
      %30 = vector.load %arg6[%c0_27, %c0_28] : memref<4x128xf32, #tpu.memory_space<vmem>>, vector<4x128xf32>
      tpu.vector_store %arg6[%c0_27, %c0_28], %29 {strides = array<i32>} : memref<4x128xf32, #tpu.memory_space<vmem>>, vector<4x128xf32>,
    } else {
    }
    return
  }
  func.func @transform_0(%arg0: i32, %arg1: i32) -> (i32, i32, i32) {
    %c0_i32 = arith.constant 0 : i32
    %c0_i32_0 = arith.constant 0 : i32
    return %arg0, %arg1, %c0_i32 : i32, i32, i32
  }
  func.func @transform_1(%arg0: i32, %arg1: i32) -> (i32, i32, i32) {
    %c0_i32 = arith.constant 0 : i32
    %c0_i32_0 = arith.constant 0 : i32
    return %arg0, %c0_i32, %arg1 : i32, i32, i32
  }
  func.func @transform_2(%arg0: i32, %arg1: i32) -> (i32, i32) {
    %c0_i32 = arith.constant 0 : i32
    %c0_i32_0 = arith.constant 0 : i32
    %c0_i32_1 = arith.constant 0 : i32
    return %c0_i32, %c0_i32_0 : i32, i32
  }
  func.func @transform_3(%arg0: i32, %arg1: i32) -> (i32, i32) {
    %c0_i32 = arith.constant 0 : i32
    %c0_i32_0 = arith.constant 0 : i32
    %c0_i32_1 = arith.constant 0 : i32
    return %c0_i32, %c0_i32_0 : i32, i32
  }
  func.func @transform_4(%arg0: i32, %arg1: i32) -> (i32, i32) {
    %c0_i32 = arith.constant 0 : i32
    %c0_i32_0 = arith.constant 0 : i32
    return %arg0, %c0_i32 : i32, i32
  }
}

</mosaic_0001>

<bundles_post_ra>
// kernel: tpu_custom_call.1
= control target key start
LH: loop header
LB: loop body
LE: loop exit
PB: predicated region body
PF: predicated region fallthrough
CT: control target
= control target key end

     0   :  { %9 = vsyncpa [#allocation5], 0  ;;  %s700_s0 = inlined_call_operand.hbm [shape: bf16[4,8,128], index: 0, kind: input, shape index: {}]   ;;  %s701_s1 = inlined_call_operand.vmem [shape: bf16[4,1,8], index: 1, kind: input, shape index: {}]   ;;  %s702_s2 = inlined_call_operand.hbm [shape: f32[128,128], index: 2, kind: input, shape index: {}]   ;;  %s703_s3 = inlined_call_operand.vmem [shape: f32[1,128], index: 3, kind: input, shape index: {}]   ;;  %s704_s4 = inlined_call_operand.hbm [shape: f32[4,128], index: 4, kind: output, shape index: {}]  }
   0x1   :  { %10 = vsyncpa [#allocation8], 0 }
   0x2   :  { %11 = vsyncpa [#allocation6], 0  ;;  %s589_s15 = smov [#allocation4]  }
   0x3   :  { %s17_s16 = sshll.u32 %s589_s15, 4  ;;  %s18_s16 = int_to_ptr.vmem [resolvable:$true] %s17_s16 }
   0x4   :  { %s531_s17 = scalar_lea.vmem %s18_s16, 256  ;;  %p536_p1 = scmp.lt.s32.totalorder %s18_s16, %s18_s16 }
   0x5   :  { %p532_p0 = scmp.ne.s32.totalorder %s18_s16, %s531_s17  ;;  %p537_p2 = scmp.lt.s32.totalorder %s531_s17, %s531_s17 }
   0x7   :  { %p538_p3 = por %p537_p2, %p536_p1 }
   0x9   :  { %p539_p4 = pnand %p538_p3, %p532_p0 }
   0xb   :  { %542 = shalt.err (!%p539_p4)
}
   0xc   :  { %s590_s18 = smov 64   ;;  %s591_s19 = smov 4  }
   0xd   :  { %23 = dma.hbm_to_vmem [thread:$0]  %s700_s0, 256, %s18_s16, [#allocation5], %s590_s18, %s590_s18, %s591_s19  }
   0xe   :  { %s592_s22 = smov [#allocation7]  }
   0xf   :  { %s31_s23 = sshll.u32 %s592_s22, 4  ;;  %s32_s23 = int_to_ptr.vmem [resolvable:$true] %s31_s23 }
  0x10   :  { %s551_s24 = scalar_lea.vmem %s32_s23, 2048  ;;  %p556_p6 = scmp.lt.s32.totalorder %s32_s23, %s32_s23 }
  0x11   :  { %p552_p5 = scmp.ne.s32.totalorder %s32_s23, %s551_s24  ;;  %p557_p7 = scmp.lt.s32.totalorder %s551_s24, %s551_s24 }
  0x13   :  { %p558_p8 = por %p557_p7, %p556_p6 }
  0x15   :  { %p559_p9 = pnand %p558_p8, %p552_p5 }
  0x17   :  { %562 = shalt.err (!%p559_p9)
}
  0x18   :  { %s593_s25 = smov 128   ;;  %s594_s26 = smov 8  }
  0x19   :  { %37 = dma.hbm_to_vmem [thread:$0]  %s702_s2, 2048, %s32_s23, [#allocation8], %s593_s25, %s593_s25, %s594_s26  }
  0x1a   :  { %583 = dma.done.wait [#allocation5], 256  }
  0x1b   :  { %584 = vsyncadd [#allocation5], 4294967040 }
  0x1c   :  { %585 = dma.done.wait [#allocation8], 2048  }
  0x1d   :  { %586 = vsyncadd [#allocation8], 4294965248  ;;  %v595_v0 = vmov 0.0   ;;  %vm596_vm0 = vmmov 0   ;;  %vm66_vm1 = vcmask 1043456   ;;  %vm270_vm2 = vcmask 57344  }
  0x1e   :  { %451 = vmatprep.subr.bf16.mxu1 %v595_v0  ;;  %51 = vst [vmem:[#allocation2] sm:$0xf] %v595_v0  ;;  %453 = vmatprep.mubr.msk.bf16.mxu1 %vm596_vm0, %v595_v0  ;;  %v54_v1 = vld [vmem:[#allocation4] sm:$0xf]  ;;  %v58_v2 = vld [vmem:[%s701_s1] sm:$0x1] }
  0x1f   :  { %475 = vmatprep.subr.mxu0 %v595_v0  ;;  %507 = vmatprep.mubr.msk.f32.mxu0 %vm596_vm0, %v595_v0  ;;  %v55_v3 = vld [vmem:[#allocation4 + $0x4] sm:$0xf]  ;;  %v68_v4 = vsel %vm66_vm1, %v54_v1, 0  ;;  %v59_v5 = vld [vmem:[%s701_s1 + $0x1] sm:$0x1]  ;;  %v266_v6 = vunpack.c.l.bf16 %v58_v2  ;;  %vm62_vm3 = vcmask 64512  }
  0x20   :  { %452 = vmatpush3.bf16.msra.mxu1 %v68_v4  ;;  %v60_v7 = vld [vmem:[%s701_s1 + $0x2] sm:$0x1]  ;;  %v267_v8 = vunpack.c.l.bf16 %v59_v5  ;;  %v114_v9 = vsel %vm66_vm1, %v55_v3, 0  ;;  %v61_v10 = vld [vmem:[%s701_s1 + $0x3] sm:$0x1]  ;;  %v319_v21 = vld [vmem:[#allocation7 + $0x78] sm:$0xff] }
  0x21   :  { %457 = vmatprep.subr.bf16.mxu1 %v595_v0  ;;  %v271_v11 = vsel %vm270_vm2, %v266_v6, 0.0  ;;  %v268_v12 = vunpack.c.l.bf16 %v60_v7  ;;  %v269_v14 = vunpack.c.l.bf16 %v61_v10  ;;  %v56_v17 = vld [vmem:[#allocation4 + $0x8] sm:$0xf]  ;;  %v57_v19 = vld [vmem:[#allocation4 + $0xc] sm:$0xf]  ;;  %476 = vmatpush3.msra.mxu0 %v319_v21  ;;  %v318_v22 = vld [vmem:[#allocation7 + $0x70] sm:$0xff] }
  0x22   :  { %v274_v13 = vsel %vm270_vm2, %v267_v8, 0.0  ;;  %272 = vadd.xlane.f32.xlu1 %v271_v11  ;;  %v160_v18 = vsel %vm66_vm1, %v56_v17, 0  ;;  %v206_v20 = vsel %vm66_vm1, %v57_v19, 0  ;;  %477 = vmatprep.subr.mxu0 %v595_v0  ;;  %v317_v23 = vld [vmem:[#allocation7 + $0x68] sm:$0xff]  ;;  %v316_v24 = vld [vmem:[#allocation7 + $0x60] sm:$0xff]  ;;  %v315_v25 = vld [vmem:[#allocation7 + $0x58] sm:$0xff] }
  0x23   :  { %454 = vmatmul.mubr.msk.bf16.vlgmr.msra.gmra.mxu1 %vm62_vm3, %v58_v2  ;;  %275 = vadd.xlane.f32.xlu0 %v274_v13  ;;  %v277_v15 = vsel %vm270_vm2, %v268_v12, 0.0  ;;  %v280_v16 = vsel %vm270_vm2, %v269_v14, 0.0  ;;  %v314_v26 = vld [vmem:[#allocation7 + $0x50] sm:$0xff]  ;;  %v313_v27 = vld [vmem:[#allocation7 + $0x48] sm:$0xff]  ;;  %v312_v28 = vld [vmem:[#allocation7 + $0x40] sm:$0xff]  ;;  %vm52_vm4 = vcmask 3072  }
  0x24   :  { %458 = vmatpush3.bf16.msra.mxu1 %v114_v9  ;;  %459 = vmatprep.mubr.msk.bf16.mxu1 %vm596_vm0, %v595_v0  ;;  %v311_v29 = vld [vmem:[#allocation7 + $0x38] sm:$0xff]  ;;  %v310_v30 = vld [vmem:[#allocation7 + $0x30] sm:$0xff]  ;;  %v309_v31 = vld [vmem:[#allocation7 + $0x28] sm:$0xff]  ;;  %53 = vst.msk [vmem:[#allocation3] sm:$0xf] %vm52_vm4, %v595_v0  ;;  %v597_v37 = vmov 0  }
  0x25   :  { %463 = vmatprep.subr.bf16.mxu1 %v595_v0  ;;  %478 = vmatpush3.msra.mxu0 %v318_v22  ;;  %v308_v32 = vld [vmem:[#allocation7 + $0x20] sm:$0xff]  ;;  %v307_v33 = vld [vmem:[#allocation7 + $0x18] sm:$0xff]  ;;  %v306_v34 = vld [vmem:[#allocation7 + $0x10] sm:$0xff]  ;;  %vm254_vm5 = vcmask 1041409   ;;  %vm257_vm6 = vcmask 1042434   ;;  %vm260_vm7 = vcmask 1043459  }
  0x26   :  { %281 = vadd.xlane.f32.xlu1 %v280_v16  ;;  %479 = vmatprep.subr.mxu0 %v595_v0  ;;  %v305_v35 = vld [vmem:[#allocation7 + $0x8] sm:$0xff]  ;;  %v304_v36 = vld [vmem:[#allocation7] sm:$0xff]  ;;  %s598_s10 = smov [#allocation9]  }
  0x27   :  { %278 = vadd.xlane.f32.xlu0 %v277_v15  ;;  %480 = vmatpush3.msra.mxu0 %v317_v23  ;;  %v425_v16 = vld [vmem:[%s703_s3] ss:$0 sm:$0xff]  ;;  %s411_s11 = sshll.u32 %s598_s10, 4  ;;  %s412_s11 = int_to_ptr.vmem [resolvable:$true] %s411_s11 }
  0x28   :  { %481 = vmatprep.subr.mxu0 %v595_v0  ;;  %520 = vset.pattern.permute.xlu0 %v597_v37  ;;  %s563_s12 = scalar_lea.vmem %s412_s11, 64  ;;  %p568_p11 = scmp.lt.s32.totalorder %s412_s11, %s412_s11 }
  0x29   :  { %482 = vmatpush3.msra.mxu0 %v316_v24  ;;  %p564_p10 = scmp.ne.s32.totalorder %s412_s11, %s563_s12  ;;  %p569_p12 = scmp.lt.s32.totalorder %s563_s12, %s563_s12 }
  0x2a   :  { %483 = vmatprep.subr.mxu0 %v595_v0 }
  0x2b   :  { %460 = vmatmul.mubr.msk.bf16.vlgmr.msra.gmra.mxu1 %vm62_vm3, %v59_v5  ;;  %484 = vmatpush3.msra.mxu0 %v315_v25  ;;  %v265_v46 = vld [vmem:[#allocation3] sm:$0xf]  ;;  %v248_v5 = vld [vmem:[#allocation2] sm:$0xf]  ;;  %p570_p13 = por %p569_p12, %p568_p11 }
  0x2c   :  { %464 = vmatpush3.bf16.msra.mxu1 %v160_v18  ;;  %465 = vmatprep.mubr.msk.bf16.mxu1 %vm596_vm0, %v595_v0 }
  0x2d   :  { %469 = vmatprep.subr.bf16.mxu1 %v595_v0  ;;  %485 = vmatprep.subr.mxu0 %v595_v0  ;;  %p571_p0 = pnand %p570_p13, %p564_p10 }
  0x2e   :  { %486 = vmatpush3.msra.mxu0 %v314_v26 }
  0x2f   :  { %487 = vmatprep.subr.mxu0 %v595_v0 }
  0x30   :  { %488 = vmatpush3.msra.mxu0 %v313_v27 }
  0x31   :  { %489 = vmatprep.subr.mxu0 %v595_v0 }
  0x32   :  { %490 = vmatpush3.msra.mxu0 %v312_v28 }
  0x33   :  { %466 = vmatmul.mubr.msk.bf16.vlgmr.msra.gmra.mxu1 %vm62_vm3, %v60_v7  ;;  %491 = vmatprep.subr.mxu0 %v595_v0 }
  0x34   :  { %470 = vmatpush3.bf16.msra.mxu1 %v206_v20  ;;  %471 = vmatprep.mubr.msk.bf16.mxu1 %vm596_vm0, %v595_v0 }
  0x35   :  { %492 = vmatpush3.msra.mxu0 %v311_v29 }
  0x36   :  { %493 = vmatprep.subr.mxu0 %v595_v0 }
  0x37   :  { %494 = vmatpush3.msra.mxu0 %v310_v30 }
  0x38   :  { %495 = vmatprep.subr.mxu0 %v595_v0 }
  0x39   :  { %496 = vmatpush3.msra.mxu0 %v309_v31 }
  0x3a   :  { %497 = vmatprep.subr.mxu0 %v595_v0 }
  0x3b   :  { %472 = vmatmul.mubr.msk.bf16.vlgmr.msra.gmra.mxu1 %vm62_vm3, %v61_v10  ;;  %498 = vmatpush3.msra.mxu0 %v308_v32 }
  0x3c   :  { %499 = vmatprep.subr.mxu0 %v595_v0 }
  0x3d   :  { %500 = vmatpush3.msra.mxu0 %v307_v33 }
  0x3e   :  { %501 = vmatprep.subr.mxu0 %v595_v0 }
  0x3f   :  { %502 = vmatpush3.msra.mxu0 %v306_v34 }
  0x40   :  { %503 = vmatprep.subr.mxu0 %v595_v0 }
  0x41   :  { %504 = vmatpush3.msra.mxu0 %v305_v35 }
  0x42   :  { %505 = vmatprep.subr.mxu0 %v595_v0 }
  0x43   :  { %506 = vmatpush3.msra.mxu0 %v304_v36 }
  0xab   :  { %v273_v38 = vpop.xlane.xlu1 %272 }
  0xac   :  { %v276_v39 = vpop.xlane.xlu0 %275 }
  0xad   :  { %v287_v40 = vrot.slane %v276_v39, 7 }
  0xaf   :  { %v282_v41 = vpop.xlane.xlu1 %281  ;;  %v288_v42 = vsel %vm254_vm5, %v287_v40, %v273_v38 }
  0xb0   :  { %v279_v43 = vpop.xlane.xlu0 %278  ;;  %v291_v44 = vrot.slane %v282_v41, 5 }
  0xb1   :  { %v289_v45 = vrot.slane %v279_v43, 6 }
  0xb3   :  { %v290_v47 = vsel %vm257_vm6, %v289_v45, %v288_v42 }
  0xb4   :  { %v292_v48 = vsel %vm260_vm7, %v291_v44, %v290_v47 }
  0xb5   :  { %v294_v49 = vadd.f32 %v292_v48, %v265_v46 }
  0xb7   :  { %296 = vst.msk [vmem:[#allocation3] sm:$0xf] %vm52_vm4, %v294_v49 }
  0xbe   :  { %v300_v50 = vld [vmem:[#allocation3] sm:$0xf] }
  0xbf   :  { %v301_v51 = vmax.f32 %v300_v50, 1e-09 }
  0xc1   :  { %521 = vrcp.f32 %v301_v51 }
  0xce   :  { %v522_v52 = vpop.eup %521 }
  0xcf   :  { %392 = vperm.xlu0 %520, %v522_v52  }
  0xe3   :  { %v104_v53 = vpop.f32.mrf.mxu1 }
  0xe5   :  { %v455_v54 = vpop.f32.mrf.mxu1 }
  0xe7   :  { %v107_v55 = vpop.f32.mrf.mxu1 }
  0xe9   :  { %v456_v56 = vpop.f32.mrf.mxu1 }
  0xeb   :  { %v150_v57 = vpop.f32.mrf.mxu1 }
  0xec   :  { %v253_v0 = vrot.slane %v150_v57, 7 }
  0xed   :  { %v461_v58 = vpop.f32.mrf.mxu1 }
  0xee   :  { %v255_v4 = vsel %vm254_vm5, %v253_v0, %v104_v53 }
  0xef   :  { %v153_v59 = vpop.f32.mrf.mxu1 }
  0xf1   :  { %v462_v60 = vpop.f32.mrf.mxu1 }
  0xf3   :  { %v196_v61 = vpop.f32.mrf.mxu1 }
  0xf4   :  { %v256_v1 = vrot.slane %v196_v61, 6 }
  0xf5   :  { %v467_v62 = vpop.f32.mrf.mxu1 }
  0xf6   :  { %v258_v7 = vsel %vm257_vm6, %v256_v1, %v255_v4 }
  0xf7   :  { %v199_v63 = vpop.f32.mrf.mxu1 }
  0xf9   :  { %v468_v2 = vpop.f32.mrf.mxu1 }
  0xfb   :  { %v242_v3 = vpop.f32.mrf.mxu1 }
  0xfc   :  { %v259_v6 = vrot.slane %v242_v3, 5 }
  0xfd   :  { %v473_v8 = vpop.f32.mrf.mxu1 }
  0xfe   :  { %v261_v9 = vsel %vm260_vm7, %v259_v6, %v258_v7 }
  0xff   :  { %v263_v10 = vadd.f32 %v261_v9, %v248_v5  ;;  %v245_v11 = vpop.f32.mrf.mxu1 }
 0x101   :  { %264 = vst [vmem:[#allocation2] sm:$0xf] %v263_v10  ;;  %v474_v12 = vpop.f32.mrf.mxu1 }
 0x108   :  { %v303_v13 = vld [vmem:[#allocation2] sm:$0xf] }
 0x109   :  { %508 = vmatmul.mubr.f32.vlgmr.msra.gmra.mxu0 %v303_v13 }
 0x14a   :  { %v393_v14 = vpop.permute.xlu0 %392 }
 0x1c9   :  { %v386_v15 = vpop.f32.mrf.mxu0 }
 0x1ca   :  { %v395_v17 = vmul.f32 %v393_v14, %v386_v15 }
 0x1cb   :  { %v509_v18 = vpop.f32.mrf.mxu0 }
 0x1cc   :  { %v403_v19 = vadd.f32 %v425_v16, %v395_v17 }
 0x1ce   :  { %404 = vst [vmem:[#allocation9] sm:$0xf] %v403_v19 }
 0x1cf   :  { %574 = shalt.err (!%p571_p0)
}
 0x1d0   :  { %414 = dma.vmem_to_hbm [thread:$0]  %s412_s11, 64, %s704_s4, [#allocation6]  }
 0x1d1   :  { %587 = dma.done.wait [#allocation6], 64  }
 0x1d2   :  { %588 = vsyncadd [#allocation6], 4294967232 }
 0x1d3   :  { %418 = vsyncpa [#allocation5], 1 }
 0x1d4   :  { %419 = vsyncpa [#allocation8], 1 }
 0x1d5   :  { %420 = vsyncpa [#allocation6], 1 }

</bundles_post_ra>
